<compile_context>
chip_gen: v6e
topology: v6e:2x2x1
jax: 0.10.0
libtpu: 0.0.40
codegen_flags: <defaults>
</compile_context>

<pallas_src>
import math
import functools

import numpy as np
import jax
import jax.numpy as jnp
from jax.experimental import pallas as pl
from jax.experimental.pallas import tpu as pltpu


# ----------------------------------------------------------------------------
# Pallas kernel
# ----------------------------------------------------------------------------
def policy_kernel(
    # inputs
    x_ref, wfold_ref, bc_ref, gamma_ref, beta_ref,
    w1_ref, b1_ref,
    wl0_ref, bl0_ref, wl1_ref, bl1_ref,
    whead_ref, bhead_ref,
    eps_ref, h_in_ref, c_in_ref,
    # outputs
    hc_ref, head_ref,
    *, hidden_dim,
):
    H = hidden_dim
    f32 = jnp.float32
    bf16 = jnp.bfloat16

    # --- AdaptiveAvgPool2d(3) + Conv2d(C, hidden, 3) folded into one matmul ----
    x = x_ref[...]                                                  # (B, C*H*W) f32
    h = jnp.dot(x.astype(bf16), wfold_ref[...],
                preferred_element_type=f32) + bc_ref[...]           # (B, H)
    h = jnp.maximum(h, 0.0)                                         # ReLU

    # --- BatchNorm2d(hidden), training mode, single-pass batch stats ----------
    mean = jnp.mean(h, axis=0, keepdims=True)
    var = jnp.mean(h * h, axis=0, keepdims=True) - mean * mean
    h = (h - mean) * jax.lax.rsqrt(var + 1e-5) * gamma_ref[...] + beta_ref[...]

    # --- AdaptiveAvgPool2d(1) is identity on 1x1; Conv2d(hidden, hidden, 1) ---
    h = jnp.dot(h.astype(bf16), w1_ref[...], preferred_element_type=f32) + b1_ref[...]

    # --- 2-layer LSTM, seq_len = 1; fused [x|h] @ [Wih; Whh], gates [i,f,o,g] --
    def lstm_cell(xx, hp, cp, w, b):
        xh = jnp.concatenate([xx, hp], axis=1).astype(bf16)         # (B, 2H)
        gates = jnp.dot(xh, w, preferred_element_type=f32) + b      # (B, 4H)
        sig = jax.nn.sigmoid(gates[:, 0:3 * H])                     # one EUP pass
        i = sig[:, 0:H]
        f = sig[:, H:2 * H]
        o = sig[:, 2 * H:3 * H]
        g = jnp.tanh(gates[:, 3 * H:4 * H])
        c = f * cp + i * g
        return o * jnp.tanh(c), c

    h0, c0 = lstm_cell(h, h_in_ref[0], c_in_ref[0], wl0_ref[...], bl0_ref[...])
    h1, c1 = lstm_cell(h0, h_in_ref[1], c_in_ref[1], wl1_ref[...], bl1_ref[...])

    # lane-dense (B, 4H) slab (4H == 128 lanes for hidden=32) -> one unmasked store
    hc_ref[...] = jnp.concatenate([h0, h1, c0, c1], axis=1)

    # --- fused mu/var heads: one (H, 2) matmul + one softplus ------------------
    mv = jax.nn.softplus(
        jnp.dot(h1, whead_ref[...], preferred_element_type=f32) + bhead_ref[...])  # (B, 2)
    mu = mv[:, 0:1]
    va = mv[:, 1:2]

    eps = eps_ref[...]                                              # (B, 1)
    action = mu + jnp.sqrt(va) * eps

    two_pi = jnp.float32(2.0 * math.pi)
    # analytic log N(action | mu, va):  -(action-mu)^2/(2 va) - 0.5*log(2*pi*va)
    logp = -0.5 * eps * eps - 0.5 * jnp.log(two_pi * va)
    # entropy matches the reference module verbatim: -0.5*(log(va + 2*pi) + 1)
    ent = -0.5 * (jnp.log(va + two_pi) + 1.0)

    head_ref[...] = jnp.concatenate([action, logp, ent, va], axis=1)  # (B, 4)


# ----------------------------------------------------------------------------
# Plain-JAX glue: pool matrix, parameter init, weight prep, pallas_call wrapper
# ----------------------------------------------------------------------------
def adaptive_pool_matrix(n_in, n_out):
    """Exact PyTorch AdaptiveAvgPool window averaging as a (n_out, n_in) matrix."""
    P = np.zeros((n_out, n_in), dtype=np.float32)
    for i in range(n_out):
        s = (i * n_in) // n_out
        e = -((-(i + 1) * n_in) // n_out)  # ceil
        P[i, s:e] = 1.0 / float(e - s)
    return P


def init_params(key, in_ch, hidden):
    ks = jax.random.split(key, 16)

    def u(k, shape, fan_in):
        b = 1.0 / np.sqrt(fan_in)
        return jax.random.uniform(k, shape, jnp.float32, minval=-b, maxval=b)

    p = {}
    # reduce branch: Conv2d(in_ch, hidden, 3) / BatchNorm2d / Conv2d(hidden, hidden, 1)
    p["wc"] = u(ks[0], (hidden, in_ch * 9), in_ch * 9)      # flattened (O, C*3*3)
    p["bc"] = u(ks[1], (1, hidden), in_ch * 9)
    p["gamma"] = jnp.ones((1, hidden), jnp.float32)
    p["beta"] = jnp.zeros((1, hidden), jnp.float32)
    p["w1"] = u(ks[2], (hidden, hidden), hidden)
    p["b1"] = u(ks[3], (1, hidden), hidden)
    # nn.LSTM(hidden, hidden, num_layers=2), PyTorch gate order i, f, g, o
    p["wih0"] = u(ks[4], (4 * hidden, hidden), hidden)
    p["whh0"] = u(ks[5], (4 * hidden, hidden), hidden)
    p["bih0"] = u(ks[6], (1, 4 * hidden), hidden)
    p["bhh0"] = u(ks[7], (1, 4 * hidden), hidden)
    p["wih1"] = u(ks[8], (4 * hidden, hidden), hidden)
    p["whh1"] = u(ks[9], (4 * hidden, hidden), hidden)
    p["bih1"] = u(ks[10], (1, 4 * hidden), hidden)
    p["bhh1"] = u(ks[11], (1, 4 * hidden), hidden)
    # hidden2mu / hidden2var
    p["wmu"] = u(ks[12], (1, hidden), hidden)
    p["bmu"] = u(ks[13], (1, 1), hidden)
    p["wvar"] = u(ks[14], (1, hidden), hidden)
    p["bvar"] = u(ks[15], (1, 1), hidden)
    return p


def _perm_gates(a, H):
    """Reorder gate blocks along the last axis from PyTorch [i,f,g,o] to [i,f,o,g]."""
    return jnp.concatenate(
        [a[..., 0:2 * H], a[..., 3 * H:4 * H], a[..., 2 * H:3 * H]], axis=-1)


def prepare_inputs(x, params, eps, h_in, c_in, hidden_dim):
    """Host-side weight folding / fusion / dtype prep (done once per weight set).

    # TODO(synk): if this layerwise kernel is called repeatedly with the same
    #             weights, cache these prepared tensors (and/or batch the calls
    #             over a grid axis) instead of re-preparing and re-DMAing them
    #             every call.
    """
    B, C, Hs, Ws = x.shape
    H = hidden_dim
    x_flat = x.reshape(B, C * Hs * Ws).astype(jnp.float32)

    # AdaptiveAvgPool2d(3) as a (C*9, C*H*W) averaging matrix, folded into the
    # conv3x3 weight -> single (C*H*W, hidden) matmul inside the kernel.
    Ph = adaptive_pool_matrix(Hs, 3)
    Pw = adaptive_pool_matrix(Ws, 3)
    P2d = np.einsum("ih,jw->ijhw", Ph, Pw).reshape(9, Hs * Ws)       # (9, H*W)
    PM = np.kron(np.eye(C, dtype=np.float32), P2d)                   # (C*9, C*H*W)
    wfold = jnp.dot(jnp.asarray(PM.T), params["wc"].T)               # (C*H*W, hidden)

    # LSTM: stack [Wih; Whh] -> (2H, 4H), pre-add bias pair, permute gate cols.
    wl0 = _perm_gates(jnp.concatenate([params["wih0"].T, params["whh0"].T], axis=0), H)
    bl0 = _perm_gates(params["bih0"] + params["bhh0"], H)
    wl1 = _perm_gates(jnp.concatenate([params["wih1"].T, params["whh1"].T], axis=0), H)
    bl1 = _perm_gates(params["bih1"] + params["bhh1"], H)

    # Fused mu/var head.
    whead = jnp.concatenate([params["wmu"].T, params["wvar"].T], axis=1)   # (H, 2)
    bhead = jnp.concatenate([params["bmu"], params["bvar"]], axis=1)       # (1, 2)

    bf16 = jnp.bfloat16
    return (
        x_flat,
        wfold.astype(bf16),
        params["bc"], params["gamma"], params["beta"],
        params["w1"].T.astype(bf16), params["b1"],
        wl0.astype(bf16), bl0,
        wl1.astype(bf16), bl1,
        whead, bhead,
        eps.astype(jnp.float32),
        h_in.astype(jnp.float32),
        c_in.astype(jnp.float32),
    )


def policy_forward(x, params, eps, h_in, c_in, *, hidden_dim, eightbit=False):
    B = x.shape[0]
    H = hidden_dim
    inputs = prepare_inputs(x, params, eps, h_in, c_in, H)

    vmem = pl.BlockSpec(memory_space=pltpu.MemorySpace.VMEM)
    out_shape = (
        jax.ShapeDtypeStruct((B, 4 * H), jnp.float32),   # [h0 | h1 | c0 | c1]
        jax.ShapeDtypeStruct((B, 4), jnp.float32),       # [action, logp, ent, va]
    )

    kernel = functools.partial(policy_kernel, hidden_dim=H)
    hc, head = pl.pallas_call(
        kernel,
        out_shape=out_shape,
        in_specs=[vmem] * len(inputs),
        out_specs=(vmem, vmem),
    )(*inputs)

    # Unpack the lane-dense LSTM state slab back to PyTorch's (2, B, H) layout.
    h_n = jnp.stack([hc[:, 0:H], hc[:, H:2 * H]], axis=0)
    c_n = jnp.stack([hc[:, 2 * H:3 * H], hc[:, 3 * H:4 * H]], axis=0)

    action = head[:, 0]
    logp = head[:, 1]
    ent = head[:, 2]

    # discretize(): clamp to [0, 6], round (half-to-even, matching torch.round).
    bit = jnp.round(jnp.clip(action, 0.0, 6.0)).astype(jnp.int32)
    if eightbit:                                          # static branch
        bit = jnp.ones_like(bit)
    bits_a = bit + 2                                      # _bit_a + 2
    bits_w = jnp.full_like(bit, 2)                        # zeros_like(_bit_a) + 2

    # squeeze() as in the PyTorch code (B > 1): everything is already (B,)
    return bits_a, bits_w, logp, ent, (h_n, c_n)


# ----------------------------------------------------------------------------
# TODO(synk): torch.randn inside forward() is replaced by an eps array drawn
#             deterministically with jax.random in the host wrapper; the
#             cross-call python-side buffers (self.bit_a cat, layer counter,
#             LSTM.flatten_parameters, running BN stats) are host bookkeeping,
#             not kernel work.
# ----------------------------------------------------------------------------
if __name__ == "__main__":
    B, C, Hs, Ws = 2, 4, 16, 16
    hidden = 32

    key = jax.random.PRNGKey(0)
    kx, kp, ke = jax.random.split(key, 3)

    x = jax.random.normal(kx, (B, C, Hs, Ws), jnp.float32)
    params = init_params(kp, C, hidden)
    eps = jax.random.normal(ke, (B, 1), jnp.float32)

    # layer == 0: init_hidden(batch_size) -> zeros for both LSTM layers
    h_in = jnp.zeros((2, B, hidden), jnp.float32)
    c_in = jnp.zeros((2, B, hidden), jnp.float32)

    outs = policy_forward(x, params, eps, h_in, c_in,
                          hidden_dim=hidden, eightbit=False)
    jax.block_until_ready(outs)
    print("KERNEL_OK")
</pallas_src>

<mosaic_0001>
module attributes {stable_mosaic.version = 11 : i64} {
  func.func @policy_kernel(%arg0: memref<2x1024xf32, #tpu.memory_space<vmem>>, %arg1: memref<1024x32xbf16, #tpu.memory_space<vmem>>, %arg2: memref<1x32xf32, #tpu.memory_space<vmem>>, %arg3: memref<1x32xf32, #tpu.memory_space<vmem>>, %arg4: memref<1x32xf32, #tpu.memory_space<vmem>>, %arg5: memref<32x32xbf16, #tpu.memory_space<vmem>>, %arg6: memref<1x32xf32, #tpu.memory_space<vmem>>, %arg7: memref<64x128xbf16, #tpu.memory_space<vmem>>, %arg8: memref<1x128xf32, #tpu.memory_space<vmem>>, %arg9: memref<64x128xbf16, #tpu.memory_space<vmem>>, %arg10: memref<1x128xf32, #tpu.memory_space<vmem>>, %arg11: memref<32x2xf32, #tpu.memory_space<vmem>>, %arg12: memref<1x2xf32, #tpu.memory_space<vmem>>, %arg13: memref<2x1xf32, #tpu.memory_space<vmem>>, %arg14: memref<2x2x32xf32, #tpu.memory_space<vmem>>, %arg15: memref<2x2x32xf32, #tpu.memory_space<vmem>>, %arg16: memref<2x128xf32, #tpu.memory_space<vmem>>, %arg17: memref<2x4xf32, #tpu.memory_space<vmem>>) attributes {dimension_semantics = [], scalar_prefetch = 0 : i64, scratch_operands = 0 : i64, tpu.core_type = #tpu.core_type<tc>} {
    %c0 = arith.constant 0 : index
    %c0_0 = arith.constant 0 : index
    %0 = vector.load %arg0[%c0, %c0_0] : memref<2x1024xf32, #tpu.memory_space<vmem>>, vector<2x1024xf32>
    %1 = arith.truncf %0 : vector<2x1024xf32> to vector<2x1024xbf16>
    %c0_1 = arith.constant 0 : index
    %c0_2 = arith.constant 0 : index
    %2 = vector.load %arg1[%c0_1, %c0_2] : memref<1024x32xbf16, #tpu.memory_space<vmem>>, vector<1024x32xbf16>
    %cst = arith.constant dense<0.000000e+00> : vector<2x32xf32>
    %3 = tpu.matmul %1, %2, %cst {dimension_numbers = #tpu.dot_dimension_numbers<[1], [0], [0], [1], [0, 0, 1, 1], [], []>} : vector<2x1024xbf16>, vector<1024x32xbf16>, vector<2x32xf32> -> vector<2x32xf32>
    %c0_3 = arith.constant 0 : index
    %c0_4 = arith.constant 0 : index
    %4 = vector.load %arg2[%c0_3, %c0_4] : memref<1x32xf32, #tpu.memory_space<vmem>>, vector<1x32xf32>
    %5 = vector.broadcast %4 : vector<1x32xf32> to vector<2x32xf32>
    %6 = arith.addf %3, %5 : vector<2x32xf32>
    %cst_5 = arith.constant 0.000000e+00 : f32
    %7 = vector.broadcast %cst_5 : f32 to vector<2x32xf32>
    %8 = arith.maximumf %6, %7 : vector<2x32xf32>
    %cst_6 = arith.constant dense<0.000000e+00> : vector<32xf32>
    %9 = vector.multi_reduction <add>, %8, %cst_6 [0] : vector<2x32xf32> to vector<32xf32>
    %10 = vector.shape_cast %9 : vector<32xf32> to vector<1x32xf32>
    %cst_7 = arith.constant 2.000000e+00 : f32
    %11 = vector.broadcast %cst_7 : f32 to vector<1x32xf32>
    %12 = arith.divf %10, %11 : vector<1x32xf32>
    %13 = arith.mulf %8, %8 : vector<2x32xf32>
    %cst_8 = arith.constant dense<0.000000e+00> : vector<32xf32>
    %14 = vector.multi_reduction <add>, %13, %cst_8 [0] : vector<2x32xf32> to vector<32xf32>
    %15 = vector.shape_cast %14 : vector<32xf32> to vector<1x32xf32>
    %cst_9 = arith.constant 2.000000e+00 : f32
    %16 = vector.broadcast %cst_9 : f32 to vector<1x32xf32>
    %17 = arith.divf %15, %16 : vector<1x32xf32>
    %18 = arith.mulf %12, %12 : vector<1x32xf32>
    %19 = arith.subf %17, %18 : vector<1x32xf32>
    %20 = vector.broadcast %12 : vector<1x32xf32> to vector<2x32xf32>
    %21 = arith.subf %8, %20 : vector<2x32xf32>
    %cst_10 = arith.constant 9.99999974E-6 : f32
    %22 = vector.broadcast %cst_10 : f32 to vector<1x32xf32>
    %23 = arith.addf %19, %22 : vector<1x32xf32>
    %24 = math.rsqrt %23 : vector<1x32xf32>
    %25 = vector.broadcast %24 : vector<1x32xf32> to vector<2x32xf32>
    %26 = arith.mulf %21, %25 : vector<2x32xf32>
    %c0_11 = arith.constant 0 : index
    %c0_12 = arith.constant 0 : index
    %27 = vector.load %arg3[%c0_11, %c0_12] : memref<1x32xf32, #tpu.memory_space<vmem>>, vector<1x32xf32>
    %28 = vector.broadcast %27 : vector<1x32xf32> to vector<2x32xf32>
    %29 = arith.mulf %26, %28 : vector<2x32xf32>
    %c0_13 = arith.constant 0 : index
    %c0_14 = arith.constant 0 : index
    %30 = vector.load %arg4[%c0_13, %c0_14] : memref<1x32xf32, #tpu.memory_space<vmem>>, vector<1x32xf32>
    %31 = vector.broadcast %30 : vector<1x32xf32> to vector<2x32xf32>
    %32 = arith.addf %29, %31 : vector<2x32xf32>
    %33 = arith.truncf %32 : vector<2x32xf32> to vector<2x32xbf16>
    %c0_15 = arith.constant 0 : index
    %c0_16 = arith.constant 0 : index
    %34 = vector.load %arg5[%c0_15, %c0_16] : memref<32x32xbf16, #tpu.memory_space<vmem>>, vector<32x32xbf16>
    %cst_17 = arith.constant dense<0.000000e+00> : vector<2x32xf32>
    %35 = tpu.matmul %33, %34, %cst_17 {dimension_numbers = #tpu.dot_dimension_numbers<[1], [0], [0], [1], [0, 0, 1, 1], [], []>} : vector<2x32xbf16>, vector<32x32xbf16>, vector<2x32xf32> -> vector<2x32xf32>
    %c0_18 = arith.constant 0 : index
    %c0_19 = arith.constant 0 : index
    %36 = vector.load %arg6[%c0_18, %c0_19] : memref<1x32xf32, #tpu.memory_space<vmem>>, vector<1x32xf32>
    %37 = vector.broadcast %36 : vector<1x32xf32> to vector<2x32xf32>
    %38 = arith.addf %35, %37 : vector<2x32xf32>
    %c0_20 = arith.constant 0 : index
    %c0_21 = arith.constant 0 : index
    %c0_22 = arith.constant 0 : index
    %39 = vector.load %arg14[%c0_20, %c0_21, %c0_22] : memref<2x2x32xf32, #tpu.memory_space<vmem>>, vector<1x2x32xf32>
    %40 = vector.shape_cast %39 : vector<1x2x32xf32> to vector<2x32xf32>
    %c0_23 = arith.constant 0 : index
    %c0_24 = arith.constant 0 : index
    %c0_25 = arith.constant 0 : index
    %41 = vector.load %arg15[%c0_23, %c0_24, %c0_25] : memref<2x2x32xf32, #tpu.memory_space<vmem>>, vector<1x2x32xf32>
    %42 = vector.shape_cast %41 : vector<1x2x32xf32> to vector<2x32xf32>
    %c0_26 = arith.constant 0 : index
    %c0_27 = arith.constant 0 : index
    %43 = vector.load %arg7[%c0_26, %c0_27] : memref<64x128xbf16, #tpu.memory_space<vmem>>, vector<64x128xbf16>
    %c0_28 = arith.constant 0 : index
    %c0_29 = arith.constant 0 : index
    %44 = vector.load %arg8[%c0_28, %c0_29] : memref<1x128xf32, #tpu.memory_space<vmem>>, vector<1x128xf32>
    %45 = tpu.concatenate %38, %40 in 1 : vector<2x32xf32>, vector<2x32xf32> -> vector<2x64xf32>
    %46 = arith.truncf %45 : vector<2x64xf32> to vector<2x64xbf16>
    %cst_30 = arith.constant dense<0.000000e+00> : vector<2x128xf32>
    %47 = tpu.matmul %46, %43, %cst_30 {dimension_numbers = #tpu.dot_dimension_numbers<[1], [0], [0], [1], [0, 0, 1, 1], [], []>} : vector<2x64xbf16>, vector<64x128xbf16>, vector<2x128xf32> -> vector<2x128xf32>
    %48 = vector.broadcast %44 : vector<1x128xf32> to vector<2x128xf32>
    %49 = arith.addf %47, %48 : vector<2x128xf32>
    %50 = vector.extract_strided_slice %49 {offsets = [0, 0], sizes = [2, 96], strides = [1, 1]} : vector<2x128xf32> to vector<2x96xf32>
    %51 = arith.negf %50 : vector<2x96xf32>
    %52 = math.exp %51 : vector<2x96xf32>
    %cst_31 = arith.constant 1.000000e+00 : f32
    %53 = vector.broadcast %cst_31 : f32 to vector<2x96xf32>
    %54 = arith.addf %53, %52 : vector<2x96xf32>
    %55 = arith.divf %53, %54 : vector<2x96xf32>
    %56 = vector.extract_strided_slice %55 {offsets = [0, 0], sizes = [2, 32], strides = [1, 1]} : vector<2x96xf32> to vector<2x32xf32>
    %57 = vector.extract_strided_slice %55 {offsets = [0, 32], sizes = [2, 32], strides = [1, 1]} : vector<2x96xf32> to vector<2x32xf32>
    %58 = vector.extract_strided_slice %55 {offsets = [0, 64], sizes = [2, 32], strides = [1, 1]} : vector<2x96xf32> to vector<2x32xf32>
    %59 = vector.extract_strided_slice %49 {offsets = [0, 96], sizes = [2, 32], strides = [1, 1]} : vector<2x128xf32> to vector<2x32xf32>
    %60 = math.tanh %59 : vector<2x32xf32>
    %61 = arith.mulf %57, %42 : vector<2x32xf32>
    %62 = arith.mulf %56, %60 : vector<2x32xf32>
    %63 = arith.addf %61, %62 : vector<2x32xf32>
    %64 = math.tanh %63 : vector<2x32xf32>
    %65 = arith.mulf %58, %64 : vector<2x32xf32>
    %c1 = arith.constant 1 : index
    %c0_32 = arith.constant 0 : index
    %c0_33 = arith.constant 0 : index
    %66 = vector.load %arg14[%c1, %c0_32, %c0_33] : memref<2x2x32xf32, #tpu.memory_space<vmem>>, vector<1x2x32xf32>
    %67 = vector.shape_cast %66 : vector<1x2x32xf32> to vector<2x32xf32>
    %c1_34 = arith.constant 1 : index
    %c0_35 = arith.constant 0 : index
    %c0_36 = arith.constant 0 : index
    %68 = vector.load %arg15[%c1_34, %c0_35, %c0_36] : memref<2x2x32xf32, #tpu.memory_space<vmem>>, vector<1x2x32xf32>
    %69 = vector.shape_cast %68 : vector<1x2x32xf32> to vector<2x32xf32>
    %c0_37 = arith.constant 0 : index
    %c0_38 = arith.constant 0 : index
    %70 = vector.load %arg9[%c0_37, %c0_38] : memref<64x128xbf16, #tpu.memory_space<vmem>>, vector<64x128xbf16>
    %c0_39 = arith.constant 0 : index
    %c0_40 = arith.constant 0 : index
    %71 = vector.load %arg10[%c0_39, %c0_40] : memref<1x128xf32, #tpu.memory_space<vmem>>, vector<1x128xf32>
    %72 = tpu.concatenate %65, %67 in 1 : vector<2x32xf32>, vector<2x32xf32> -> vector<2x64xf32>
    %73 = arith.truncf %72 : vector<2x64xf32> to vector<2x64xbf16>
    %cst_41 = arith.constant dense<0.000000e+00> : vector<2x128xf32>
    %74 = tpu.matmul %73, %70, %cst_41 {dimension_numbers = #tpu.dot_dimension_numbers<[1], [0], [0], [1], [0, 0, 1, 1], [], []>} : vector<2x64xbf16>, vector<64x128xbf16>, vector<2x128xf32> -> vector<2x128xf32>
    %75 = vector.broadcast %71 : vector<1x128xf32> to vector<2x128xf32>
    %76 = arith.addf %74, %75 : vector<2x128xf32>
    %77 = vector.extract_strided_slice %76 {offsets = [0, 0], sizes = [2, 96], strides = [1, 1]} : vector<2x128xf32> to vector<2x96xf32>
    %78 = arith.negf %77 : vector<2x96xf32>
    %79 = math.exp %78 : vector<2x96xf32>
    %cst_42 = arith.constant 1.000000e+00 : f32
    %80 = vector.broadcast %cst_42 : f32 to vector<2x96xf32>
    %81 = arith.addf %80, %79 : vector<2x96xf32>
    %82 = arith.divf %80, %81 : vector<2x96xf32>
    %83 = vector.extract_strided_slice %82 {offsets = [0, 0], sizes = [2, 32], strides = [1, 1]} : vector<2x96xf32> to vector<2x32xf32>
    %84 = vector.extract_strided_slice %82 {offsets = [0, 32], sizes = [2, 32], strides = [1, 1]} : vector<2x96xf32> to vector<2x32xf32>
    %85 = vector.extract_strided_slice %82 {offsets = [0, 64], sizes = [2, 32], strides = [1, 1]} : vector<2x96xf32> to vector<2x32xf32>
    %86 = vector.extract_strided_slice %76 {offsets = [0, 96], sizes = [2, 32], strides = [1, 1]} : vector<2x128xf32> to vector<2x32xf32>
    %87 = math.tanh %86 : vector<2x32xf32>
    %88 = arith.mulf %84, %69 : vector<2x32xf32>
    %89 = arith.mulf %83, %87 : vector<2x32xf32>
    %90 = arith.addf %88, %89 : vector<2x32xf32>
    %91 = math.tanh %90 : vector<2x32xf32>
    %92 = arith.mulf %85, %91 : vector<2x32xf32>
    %93 = tpu.concatenate %65, %92, %63, %90 in 1 : vector<2x32xf32>, vector<2x32xf32>, vector<2x32xf32>, vector<2x32xf32> -> vector<2x128xf32>
    %c0_43 = arith.constant 0 : index
    %c0_44 = arith.constant 0 : index
    %94 = vector.load %arg16[%c0_43, %c0_44] : memref<2x128xf32, #tpu.memory_space<vmem>>, vector<2x128xf32>
    tpu.vector_store %arg16[%c0_43, %c0_44], %93 {strides = array<i32>} : memref<2x128xf32, #tpu.memory_space<vmem>>, vector<2x128xf32>,
    %c0_45 = arith.constant 0 : index
    %c0_46 = arith.constant 0 : index
    %95 = vector.load %arg11[%c0_45, %c0_46] : memref<32x2xf32, #tpu.memory_space<vmem>>, vector<32x2xf32>
    %cst_47 = arith.constant dense<0.000000e+00> : vector<2x2xf32>
    %96 = tpu.matmul %92, %95, %cst_47 {dimension_numbers = #tpu.dot_dimension_numbers<[1], [0], [0], [1], [0, 0, 1, 1], [], []>} : vector<2x32xf32>, vector<32x2xf32>, vector<2x2xf32> -> vector<2x2xf32>
    %c0_48 = arith.constant 0 : index
    %c0_49 = arith.constant 0 : index
    %97 = vector.load %arg12[%c0_48, %c0_49] : memref<1x2xf32, #tpu.memory_space<vmem>>, vector<1x2xf32>
    %98 = vector.broadcast %97 : vector<1x2xf32> to vector<2x2xf32>
    %99 = arith.addf %96, %98 : vector<2x2xf32>
    %cst_50 = arith.constant 0.000000e+00 : f32
    %100 = vector.broadcast %cst_50 : f32 to vector<2x2xf32>
    %101 = arith.maximumf %99, %100 : vector<2x2xf32>
    %102 = vector.broadcast %cst_50 : f32 to vector<2x2xf32>
    %103 = arith.subf %99, %102 : vector<2x2xf32>
    %104 = arith.cmpf one, %103, %103 : vector<2x2xf32>
    %105 = vector.broadcast %cst_50 : f32 to vector<2x2xf32>
    %106 = arith.addf %99, %105 : vector<2x2xf32>
    %107 = math.absf %103 : vector<2x2xf32>
    %cst_51 = arith.constant 0.000000e+00 : f32
    %108 = vector.broadcast %cst_51 : f32 to vector<2x2xf32>
    %109 = arith.subf %108, %107 : vector<2x2xf32>
    %110 = math.exp %109 : vector<2x2xf32>
    %111 = math.log1p %110 : vector<2x2xf32>
    %112 = arith.addf %101, %111 : vector<2x2xf32>
    %113 = arith.select %104, %106, %112 : vector<2x2xi1>, vector<2x2xf32>
    %114 = vector.extract_strided_slice %113 {offsets = [0, 0], sizes = [2, 1], strides = [1, 1]} : vector<2x2xf32> to vector<2x1xf32>
    %115 = vector.extract_strided_slice %113 {offsets = [0, 1], sizes = [2, 1], strides = [1, 1]} : vector<2x2xf32> to vector<2x1xf32>
    %c0_52 = arith.constant 0 : index
    %c0_53 = arith.constant 0 : index
    %116 = vector.load %arg13[%c0_52, %c0_53] : memref<2x1xf32, #tpu.memory_space<vmem>>, vector<2x1xf32>
    %117 = math.sqrt %115 : vector<2x1xf32>
    %118 = arith.mulf %117, %116 : vector<2x1xf32>
    %119 = arith.addf %114, %118 : vector<2x1xf32>
    %cst_54 = arith.constant -5.000000e-01 : f32
    %120 = vector.broadcast %cst_54 : f32 to vector<2x1xf32>
    %121 = arith.mulf %120, %116 : vector<2x1xf32>
    %122 = arith.mulf %121, %116 : vector<2x1xf32>
    %cst_55 = arith.constant 6.28318548 : f32
    %123 = vector.broadcast %cst_55 : f32 to vector<2x1xf32>
    %124 = arith.mulf %123, %115 : vector<2x1xf32>
    %125 = math.log %124 : vector<2x1xf32>
    %cst_56 = arith.constant 5.000000e-01 : f32
    %126 = vector.broadcast %cst_56 : f32 to vector<2x1xf32>
    %127 = arith.mulf %126, %125 : vector<2x1xf32>
    %128 = arith.subf %122, %127 : vector<2x1xf32>
    %cst_57 = arith.constant 6.28318548 : f32
    %129 = vector.broadcast %cst_57 : f32 to vector<2x1xf32>
    %130 = arith.addf %115, %129 : vector<2x1xf32>
    %131 = math.log %130 : vector<2x1xf32>
    %cst_58 = arith.constant 1.000000e+00 : f32
    %132 = vector.broadcast %cst_58 : f32 to vector<2x1xf32>
    %133 = arith.addf %131, %132 : vector<2x1xf32>
    %cst_59 = arith.constant -5.000000e-01 : f32
    %134 = vector.broadcast %cst_59 : f32 to vector<2x1xf32>
    %135 = arith.mulf %134, %133 : vector<2x1xf32>
    %136 = tpu.concatenate %119, %128, %135, %115 in 1 : vector<2x1xf32>, vector<2x1xf32>, vector<2x1xf32>, vector<2x1xf32> -> vector<2x4xf32>
    %c0_60 = arith.constant 0 : index
    %c0_61 = arith.constant 0 : index
    %137 = vector.load %arg17[%c0_60, %c0_61] : memref<2x4xf32, #tpu.memory_space<vmem>>, vector<2x4xf32>
    tpu.vector_store %arg17[%c0_60, %c0_61], %136 {strides = array<i32>} : memref<2x4xf32, #tpu.memory_space<vmem>>, vector<2x4xf32>,
    return
  }
}

</mosaic_0001>

<bundles_post_ra>
// kernel: tpu_custom_call.1
= control target key start
LH: loop header
LB: loop body
LE: loop exit
PB: predicated region body
PF: predicated region fallthrough
CT: control target
= control target key end

     0   :  { %s2191_s0 = inlined_call_operand.vmem [shape: f32[2,1024], index: 0, kind: input, shape index: {}]   ;;  %s2192_s1 = inlined_call_operand.vmem [shape: bf16[1024,32], index: 1, kind: input, shape index: {}]   ;;  %s2193_s2 = inlined_call_operand.vmem [shape: f32[1,32], index: 2, kind: input, shape index: {}]   ;;  %s2194_s3 = inlined_call_operand.vmem [shape: f32[1,32], index: 3, kind: input, shape index: {}]   ;;  %s2195_s4 = inlined_call_operand.vmem [shape: f32[1,32], index: 4, kind: input, shape index: {}]   ;;  %s2196_s5 = inlined_call_operand.vmem [shape: bf16[32,32], index: 5, kind: input, shape index: {}]   ;;  %s2197_s6 = inlined_call_operand.vmem [shape: f32[1,32], index: 6, kind: input, shape index: {}]   ;;  %s2198_s7 = inlined_call_operand.vmem [shape: bf16[64,128], index: 7, kind: input, shape index: {}]   ;;  %s2199_s8 = inlined_call_operand.vmem [shape: f32[1,128], index: 8, kind: input, shape index: {}]   ;;  %s2200_s9 = inlined_call_operand.vmem [shape: bf16[64,128], index: 9, kind: input, shape index: {}]   ;;  %s2201_s10 = inlined_call_operand.vmem [shape: f32[1,128], index: 10, kind: input, shape index: {}]   ;;  %s2202_s11 = inlined_call_operand.vmem [shape: f32[32,2], index: 11, kind: input, shape index: {}]   ;;  %s2203_s12 = inlined_call_operand.vmem [shape: f32[1,2], index: 12, kind: input, shape index: {}]   ;;  %s2204_s13 = inlined_call_operand.vmem [shape: f32[2,1], index: 13, kind: input, shape index: {}]   ;;  %s2205_s14 = inlined_call_operand.vmem [shape: f32[2,2,32], index: 14, kind: input, shape index: {}]   ;;  %s2206_s15 = inlined_call_operand.vmem [shape: f32[2,2,32], index: 15, kind: input, shape index: {}]   ;;  %s2207_s16 = inlined_call_operand.hbm [shape: f32[2,128], index: 16, kind: output, shape index: {0}]   ;;  %s2208_s17 = inlined_call_operand.hbm [shape: f32[2,4], index: 17, kind: output, shape index: {1}]  }
   0x1   :  { %2211 = sst [smem:[#allocation8_spill]] %s2191_s0 }
   0x2   :  { %2212 = sst [smem:[#allocation9_spill]] %s2192_s1 }
   0x3   :  { %23 = vsyncpa [#allocation3], 0  ;;  %s2213_s26 = sld [smem:[#allocation9_spill]]  ;;  %v66_v28 = vlaneseq  ;;  %v1743_v36 = vmov 1983009808  }
   0x4   :  { %s2214_s20 = sld [smem:[#allocation8_spill]]  ;;  %v64_v37 = vunpack.c.l.s4 %v1743_v36 }
   0x5   :  { %v67_v33 = vshrl.u32 %v66_v28, 7 }
   0x6   :  { %v65_v39 = vunpack.c.0.s8 %v64_v37 }
   0x8   :  { %v1949_v41 = vsub.s32 %v65_v39, %v67_v33 }
   0x9   :  { %v1595_v0 = vld [vmem:[%s2213_s26 + $0x78] sm:$0xff]   ;;  %v1599_v4 = vld [vmem:[%s2213_s26 + $0x70] sm:$0xff]   ;;  %v1603_v8 = vld [vmem:[%s2213_s26 + $0x68] sm:$0xff]  }
   0xa   :  { %v1596_v1 = vld [vmem:[%s2213_s26 + $0xf8] sm:$0xff]   ;;  %1435 = vmatprep.subr.bf16.mxu0 %v1595_v0  ;;  %v1600_v5 = vld [vmem:[%s2213_s26 + $0xf0] sm:$0xff]   ;;  %v1604_v9 = vld [vmem:[%s2213_s26 + $0xe8] sm:$0xff]  }
   0xb   :  { %v1597_v2 = vld [vmem:[%s2213_s26 + $0x38] sm:$0xff]   ;;  %1457 = vmatprep.subr.bf16.mxu1 %v1596_v1  ;;  %v1601_v6 = vld [vmem:[%s2213_s26 + $0x30] sm:$0xff]   ;;  %v1605_v10 = vld [vmem:[%s2213_s26 + $0x28] sm:$0xff]  }
   0xc   :  { %v1598_v3 = vld [vmem:[%s2213_s26 + $0xb8] sm:$0xff]   ;;  %1436 = vmatpush3.bf16.msra.mxu0 %v1597_v2  ;;  %v1602_v7 = vld [vmem:[%s2213_s26 + $0xb0] sm:$0xff]   ;;  %v1606_v11 = vld [vmem:[%s2213_s26 + $0xa8] sm:$0xff]  }
   0xd   :  { %1458 = vmatpush3.bf16.msra.mxu1 %v1598_v3  ;;  %1437 = vmatprep.subr.bf16.mxu0 %v1599_v4  ;;  %v1607_v12 = vld [vmem:[%s2213_s26 + $0x60] sm:$0xff]   ;;  %v1611_v16 = vld [vmem:[%s2213_s26 + $0x58] sm:$0xff]   ;;  %v1615_v20 = vld [vmem:[%s2213_s26 + $0x50] sm:$0xff]  }
   0xe   :  { %1459 = vmatprep.subr.bf16.mxu1 %v1600_v5  ;;  %v1608_v13 = vld [vmem:[%s2213_s26 + $0xe0] sm:$0xff]   ;;  %v1612_v17 = vld [vmem:[%s2213_s26 + $0xd8] sm:$0xff]   ;;  %v1616_v21 = vld [vmem:[%s2213_s26 + $0xd0] sm:$0xff]  }
   0xf   :  { %v1609_v14 = vld [vmem:[%s2213_s26 + $0x20] sm:$0xff]   ;;  %v1613_v18 = vld [vmem:[%s2213_s26 + $0x18] sm:$0xff]   ;;  %v1617_v22 = vld [vmem:[%s2213_s26 + $0x10] sm:$0xff]  }
  0x10   :  { %1438 = vmatpush3.bf16.msra.mxu0 %v1601_v6  ;;  %v1610_v15 = vld [vmem:[%s2213_s26 + $0xa0] sm:$0xff]   ;;  %v1614_v19 = vld [vmem:[%s2213_s26 + $0x98] sm:$0xff]   ;;  %v1618_v23 = vld [vmem:[%s2213_s26 + $0x90] sm:$0xff]  }
  0x11   :  { %1460 = vmatpush3.bf16.msra.mxu1 %v1602_v7  ;;  %1439 = vmatprep.subr.bf16.mxu0 %v1603_v8  ;;  %v1619_v24 = vld [vmem:[%s2213_s26 + $0x48] sm:$0xff]   ;;  %v1623_v29 = vld [vmem:[%s2213_s26 + $0x40] sm:$0xff]   ;;  %v1628_v35 = vld [vmem:[%s2213_s26 + $0x178] sm:$0xff]  }
  0x12   :  { %1461 = vmatprep.subr.bf16.mxu1 %v1604_v9  ;;  %v1620_v25 = vld [vmem:[%s2213_s26 + $0xc8] sm:$0xff]   ;;  %v1624_v30 = vld [vmem:[%s2213_s26 + $0xc0] sm:$0xff]   ;;  %v1629_v38 = vld [vmem:[%s2213_s26 + $0x1f8] sm:$0xff]  }
  0x13   :  { %v1621_v26 = vld [vmem:[%s2213_s26 + $0x8] sm:$0xff]   ;;  %v1625_v31 = vld [vmem:[%s2213_s26] sm:$0xff]   ;;  %v1630_v46 = vld [vmem:[%s2213_s26 + $0x138] sm:$0xff]  }
  0x14   :  { %1440 = vmatpush3.bf16.msra.mxu0 %v1605_v10  ;;  %v1622_v27 = vld [vmem:[%s2213_s26 + $0x88] sm:$0xff]   ;;  %v1626_v32 = vld [vmem:[%s2213_s26 + $0x80] sm:$0xff]   ;;  %v1631_v49 = vld [vmem:[%s2213_s26 + $0x1b8] sm:$0xff]  }
  0x15   :  { %1462 = vmatpush3.bf16.msra.mxu1 %v1606_v11  ;;  %1441 = vmatprep.subr.bf16.mxu0 %v1607_v12  ;;  %v58_v34 = vld [vmem:[%s2214_s20] sm:$0xff]  ;;  %v1632_v52 = vld [vmem:[%s2213_s26 + $0x170] sm:$0xff]   ;;  %v1636_v56 = vld [vmem:[%s2213_s26 + $0x168] sm:$0xff]  }
  0x16   :  { %1463 = vmatprep.subr.bf16.mxu1 %v1608_v13  ;;  %v62_v40 = vcombine.high %v58_v34, %v58_v34  ;;  %v69_v42 = vrot.slane %v58_v34, %v1949_v41  ;;  %v1633_v53 = vld [vmem:[%s2213_s26 + $0x1f0] sm:$0xff]   ;;  %v1637_v57 = vld [vmem:[%s2213_s26 + $0x1e8] sm:$0xff]   ;;  %v1640_v60 = vld [vmem:[%s2213_s26 + $0x160] sm:$0xff]  }
  0x17   :  { %v1634_v54 = vld [vmem:[%s2213_s26 + $0x130] sm:$0xff]   ;;  %v1638_v58 = vld [vmem:[%s2213_s26 + $0x128] sm:$0xff]   ;;  %v1641_v61 = vld [vmem:[%s2213_s26 + $0x1e0] sm:$0xff]  }
  0x18   :  { %1442 = vmatpush3.bf16.msra.mxu0 %v1609_v14  ;;  %v76_v43 = vrot.slane %v62_v40, %v1949_v41  ;;  %v77_v44 = vcombine.high %v69_v42, %v69_v42  ;;  %v104_v47 = vpack.c.bf16 %v69_v42, %v69_v42  ;;  %v1635_v55 = vld [vmem:[%s2213_s26 + $0x1b0] sm:$0xff]   ;;  %v1639_v59 = vld [vmem:[%s2213_s26 + $0x1a8] sm:$0xff]   ;;  %v1642_v62 = vld [vmem:[%s2213_s26 + $0x120] sm:$0xff]  }
  0x19   :  { %1464 = vmatpush3.bf16.msra.mxu1 %v1610_v15  ;;  %1443 = vmatprep.subr.bf16.mxu0 %v1611_v16  ;;  %v1643_v63 = vld [vmem:[%s2213_s26 + $0x1a0] sm:$0xff]   ;;  %v1644_v0 = vld [vmem:[%s2213_s26 + $0x158] sm:$0xff]   ;;  %v1648_v4 = vld [vmem:[%s2213_s26 + $0x150] sm:$0xff]  }
  0x1a   :  { %1465 = vmatprep.subr.bf16.mxu1 %v1612_v17  ;;  %v78_v45 = vcombine.high %v76_v43, %v76_v43  ;;  %v106_v48 = vpack.c.bf16 %v76_v43, %v76_v43  ;;  %v105_v50 = vpack.c.bf16 %v77_v44, %v77_v44  ;;  %v1645_v1 = vld [vmem:[%s2213_s26 + $0x1d8] sm:$0xff]   ;;  %v1649_v5 = vld [vmem:[%s2213_s26 + $0x1d0] sm:$0xff]   ;;  %v1652_v8 = vld [vmem:[%s2213_s26 + $0x148] sm:$0xff]  }
  0x1b   :  { %v1646_v2 = vld [vmem:[%s2213_s26 + $0x118] sm:$0xff]   ;;  %v1650_v6 = vld [vmem:[%s2213_s26 + $0x110] sm:$0xff]   ;;  %v1653_v9 = vld [vmem:[%s2213_s26 + $0x1c8] sm:$0xff]  }
  0x1c   :  { %1444 = vmatpush3.bf16.msra.mxu0 %v1613_v18  ;;  %v107_v51 = vpack.c.bf16 %v78_v45, %v78_v45  ;;  %663 = vmatprep.mubr.bf16.mxu0 %v105_v50  ;;  %v1647_v3 = vld [vmem:[%s2213_s26 + $0x198] sm:$0xff]   ;;  %v1651_v7 = vld [vmem:[%s2213_s26 + $0x190] sm:$0xff]   ;;  %v59_v10 = vld [vmem:[%s2214_s20 + $0x8] sm:$0xff] }
  0x1d   :  { %1466 = vmatpush3.bf16.msra.mxu1 %v1614_v19  ;;  %1445 = vmatprep.subr.bf16.mxu0 %v1615_v20  ;;  %v1654_v11 = vld [vmem:[%s2213_s26 + $0x108] sm:$0xff]   ;;  %v86_v13 = vrot.slane %v59_v10, %v1949_v41  ;;  %v79_v14 = vcombine.high %v59_v10, %v59_v10  ;;  %v1656_v15 = vld [vmem:[%s2213_s26 + $0x140] sm:$0xff]  }
  0x1e   :  { %1467 = vmatprep.subr.bf16.mxu1 %v1616_v21  ;;  %703 = vmatprep.mubr.bf16.mxu1 %v107_v51  ;;  %v1655_v12 = vld [vmem:[%s2213_s26 + $0x188] sm:$0xff]   ;;  %v1657_v16 = vld [vmem:[%s2213_s26 + $0x1c0] sm:$0xff]  }
  0x1f   :  { %v94_v17 = vcombine.high %v86_v13, %v86_v13  ;;  %v93_v18 = vrot.slane %v79_v14, %v1949_v41  ;;  %v1658_v19 = vld [vmem:[%s2213_s26 + $0x100] sm:$0xff]  }
  0x20   :  { %1446 = vmatpush3.bf16.msra.mxu0 %v1617_v22  ;;  %v1659_v22 = vld [vmem:[%s2213_s26 + $0x180] sm:$0xff]  }
  0x21   :  { %1468 = vmatpush3.bf16.msra.mxu1 %v1618_v23  ;;  %1447 = vmatprep.subr.bf16.mxu0 %v1619_v24  ;;  %v109_v20 = vpack.c.bf16 %v94_v17, %v94_v17  ;;  %v95_v21 = vcombine.high %v93_v18, %v93_v18 }
  0x22   :  { %1469 = vmatprep.subr.bf16.mxu1 %v1620_v25 }
  0x23   :  { %v111_v23 = vpack.c.bf16 %v95_v21, %v95_v21 }
  0x24   :  { %1448 = vmatpush3.bf16.msra.mxu0 %v1621_v26 }
  0x25   :  { %1470 = vmatpush3.bf16.msra.mxu1 %v1622_v27  ;;  %1449 = vmatprep.subr.bf16.mxu0 %v1623_v29 }
  0x26   :  { %1471 = vmatprep.subr.bf16.mxu1 %v1624_v30 }
  0x28   :  { %1450 = vmatpush3.bf16.msra.mxu0 %v1625_v31 }
  0x29   :  { %1472 = vmatpush3.bf16.msra.mxu1 %v1626_v32  ;;  %1479 = vmatprep.subr.bf16.mxu0 %v1628_v35 }
  0x2a   :  { %1501 = vmatprep.subr.bf16.mxu1 %v1629_v38 }
  0x2b   :  { %664 = vmatmul.mubr.bf16.vlgmr.msra.gmra.mxu0 %v104_v47 }
  0x2c   :  { %704 = vmatmul.mubr.bf16.vlgmr.msra.gmra.mxu1 %v106_v48  ;;  %1480 = vmatpush3.bf16.msra.mxu0 %v1630_v46 }
  0x2d   :  { %1502 = vmatpush3.bf16.msra.mxu1 %v1631_v49  ;;  %1481 = vmatprep.subr.bf16.mxu0 %v1632_v52 }
  0x2e   :  { %1503 = vmatprep.subr.bf16.mxu1 %v1633_v53 }
  0x30   :  { %1482 = vmatpush3.bf16.msra.mxu0 %v1634_v54 }
  0x31   :  { %1504 = vmatpush3.bf16.msra.mxu1 %v1635_v55  ;;  %1483 = vmatprep.subr.bf16.mxu0 %v1636_v56 }
  0x32   :  { %1505 = vmatprep.subr.bf16.mxu1 %v1637_v57 }
  0x34   :  { %1484 = vmatpush3.bf16.msra.mxu0 %v1638_v58 }
  0x35   :  { %1506 = vmatpush3.bf16.msra.mxu1 %v1639_v59  ;;  %1485 = vmatprep.subr.bf16.mxu0 %v1640_v60 }
  0x36   :  { %1507 = vmatprep.subr.bf16.mxu1 %v1641_v61 }
  0x38   :  { %1486 = vmatpush3.bf16.msra.mxu0 %v1642_v62 }
  0x39   :  { %1508 = vmatpush3.bf16.msra.mxu1 %v1643_v63  ;;  %1487 = vmatprep.subr.bf16.mxu0 %v1644_v0 }
  0x3a   :  { %1509 = vmatprep.subr.bf16.mxu1 %v1645_v1 }
  0x3c   :  { %1488 = vmatpush3.bf16.msra.mxu0 %v1646_v2 }
  0x3d   :  { %1510 = vmatpush3.bf16.msra.mxu1 %v1647_v3  ;;  %1489 = vmatprep.subr.bf16.mxu0 %v1648_v4 }
  0x3e   :  { %1511 = vmatprep.subr.bf16.mxu1 %v1649_v5 }
  0x40   :  { %1490 = vmatpush3.bf16.msra.mxu0 %v1650_v6 }
  0x41   :  { %1512 = vmatpush3.bf16.msra.mxu1 %v1651_v7  ;;  %1491 = vmatprep.subr.bf16.mxu0 %v1652_v8 }
  0x42   :  { %1513 = vmatprep.subr.bf16.mxu1 %v1653_v9 }
  0x44   :  { %1492 = vmatpush3.bf16.msra.mxu0 %v1654_v11 }
  0x45   :  { %1514 = vmatpush3.bf16.msra.mxu1 %v1655_v12 }
  0x46   :  { %24 = vsyncpa [#allocation5], 0  ;;  %1493 = vmatprep.subr.bf16.mxu0 %v1656_v15  ;;  %1515 = vmatprep.subr.bf16.mxu1 %v1657_v16  ;;  %v108_v24 = vpack.c.bf16 %v86_v13, %v86_v13  ;;  %v110_v25 = vpack.c.bf16 %v93_v18, %v93_v18  ;;  %v1661_v26 = vld [vmem:[%s2196_s5 + $0x8] sm:$0xff]   ;;  %v1744_v27 = vmov 0.0   ;;  %v1662_v28 = vld [vmem:[%s2196_s5] sm:$0xff]   ;;  %vm1745_vm0 = vmmov 0  }
  0x47   :  { %743 = vmatprep.mubr.bf16.mxu0 %v109_v20  ;;  %783 = vmatprep.mubr.bf16.mxu1 %v111_v23  ;;  %v901_v29 = vld [vmem:[%s2205_s14] sm:$0x3]  ;;  %v1663_v30 = vld [vmem:[%s2198_s7 + $0x18] sm:$0xff]   ;;  %s1746_s29 = smov 32   ;;  %v1664_v31 = vld [vmem:[%s2198_s7 + $0x10] sm:$0xff]   ;;  %vm792_vm1 = vcmask 254976  }
  0x48   :  { %1494 = vmatpush3.bf16.msra.mxu0 %v1658_v19  ;;  %913 = vrot.lane.b32.xlu0 %v901_v29, %s1746_s29  ;;  %v1665_v32 = vld [vmem:[%s2198_s7 + $0x8] sm:$0xff]   ;;  %v1346_v42 = vld [vmem:[%s2193_s2] ss:$0 sm:$0xff]  ;;  %vm857_vm2 = vcmask 261120   ;;  %vm948_vm3 = vcmask 523264   ;;  %s1747_s22 = smov 64  }
  0x49   :  { %1516 = vmatpush3.bf16.msra.mxu1 %v1659_v22  ;;  %1541 = vmatprep.subr.bf16.mxu0 %v1744_v27  ;;  %v1411_v17 = vld [vmem:[%s2194_s3] ss:$0 sm:$0xff]  ;;  %s1751_s28 = smov 2   ;;  %s1752_s5 = smov [#allocation2]   ;;  %vm1158_vm8 = vcmask 785408  }
  0x4a   :  { %1549 = vmatprep.subr.bf16.mxu1 %v1744_v27  ;;  %v1412_v19 = vld [vmem:[%s2195_s4] ss:$0 sm:$0xff]  ;;  %s1324_s0 = sshll.u32 %s1752_s5, 4  ;;  %s1325_s0 = int_to_ptr.vmem [resolvable:$true] %s1324_s0 }
  0x4b   :  { %744 = vmatmul.mubr.bf16.vlgmr.msra.gmra.mxu0 %v108_v24  ;;  %v1666_v23 = vld [vmem:[%s2198_s7] sm:$0xff]   ;;  %p1704_p1 = scmp.lt.s32.totalorder %s1325_s0, %s1325_s0 }
  0x4c   :  { %784 = vmatmul.mubr.bf16.vlgmr.msra.gmra.mxu1 %v110_v25  ;;  %1542 = vmatpush3.bf16.msra.mxu0 %v1661_v26  ;;  %v902_v24 = vld [vmem:[%s2206_s15] sm:$0x3] }
  0x4d   :  { %1543 = vmatprep.subr.bf16.mxu0 %v1744_v27  ;;  %1545 = vmatprep.mubr.msk.bf16.mxu0 %vm1745_vm0, %v1744_v27  ;;  %v1413_v25 = vld [vmem:[%s2197_s6] ss:$0 sm:$0xff]  ;;  %s1748_s6 = smov 1  }
  0x4e   :  { %1557 = vmatprep.mubr.msk.bf16.mxu1 %vm1745_vm0, %v1744_v27  ;;  %1550 = vmatpush3.bf16.msra.mxu1 %v1663_v30 }
  0x4f   :  { %1551 = vmatprep.subr.bf16.mxu1 %v1744_v27  ;;  %1000 = vrot.lane.b32.xlu1 %v902_v24, %s1746_s29 }
  0x50   :  { %1544 = vmatpush3.bf16.msra.mxu0 %v1662_v28 }
  0x51   :  { %1561 = vmatprep.subr.bf16.mxu0 %v1744_v27 }
  0x52   :  { %1552 = vmatpush3.bf16.msra.mxu1 %v1664_v31 }
  0x53   :  { %1553 = vmatprep.subr.bf16.mxu1 %v1744_v27 }
  0x56   :  { %1554 = vmatpush3.bf16.msra.mxu1 %v1665_v32 }
  0x57   :  { %1555 = vmatprep.subr.bf16.mxu1 %v1744_v27 }
  0x5a   :  { %1556 = vmatpush3.bf16.msra.mxu1 %v1666_v23  ;;  %v1264_v23 = vld [vmem:[%s2204_s13] sm:$0x3]  ;;  %s1750_s13 = smov 96  }
  0x5b   :  { %1573 = vmatprep.subr.mxu1 %v1744_v27 }
  0xba   :  { %v914_v28 = vpop.permute.xlu0 %913 }
  0xeb   :  { %v1451_v33 = vpop.f32.mrf.mxu0 }
  0xec   :  { %v1473_v34 = vpop.f32.mrf.mxu1 }
  0xed   :  { %v1452_v35 = vpop.f32.mrf.mxu0 }
  0xee   :  { %v1474_v36 = vpop.f32.mrf.mxu1  ;;  %v1453_v41 = vadd.f32 %v1452_v35, %v1451_v33  ;;  %v1417_v35 = vld [vmem:[%s2199_s8] ss:$0 sm:$0xff] }
  0xef   :  { %v1454_v37 = vpop.f32.mrf.mxu0  ;;  %v1475_v44 = vadd.f32 %v1474_v36, %v1473_v34 }
  0xf0   :  { %v1476_v38 = vpop.f32.mrf.mxu1  ;;  %v666_v43 = vadd.f32 %v1453_v41, %v1346_v42 }
  0xf1   :  { %v1455_v39 = vpop.f32.mrf.mxu0 }
  0xf2   :  { %v1477_v40 = vpop.f32.mrf.mxu1  ;;  %v706_v49 = vadd.f32 %v1475_v44, %v666_v43 }
 0x10b   :  { %v1495_v45 = vpop.f32.mrf.mxu0 }
 0x10c   :  { %v1517_v46 = vpop.f32.mrf.mxu1 }
 0x10d   :  { %v1496_v47 = vpop.f32.mrf.mxu0 }
 0x10e   :  { %v1518_v48 = vpop.f32.mrf.mxu1  ;;  %v1497_v50 = vadd.f32 %v1496_v47, %v1495_v45 }
 0x10f   :  { %v1498_v51 = vpop.f32.mrf.mxu0  ;;  %v1519_v54 = vadd.f32 %v1518_v48, %v1517_v46  ;;  %v1001_v48 = vpop.permute.xlu1 %1000 }
 0x110   :  { %v1520_v52 = vpop.f32.mrf.mxu1  ;;  %v746_v53 = vadd.f32 %v1497_v50, %v706_v49 }
 0x111   :  { %v1499_v55 = vpop.f32.mrf.mxu0  ;;  %v1667_v52 = vld [vmem:[%s2200_s9 + $0x18] sm:$0xff]  }
 0x112   :  { %v1521_v56 = vpop.f32.mrf.mxu1  ;;  %v786_v57 = vadd.f32 %v1519_v54, %v746_v53  ;;  %v1668_v53 = vld [vmem:[%s2200_s9 + $0x10] sm:$0xff]   ;;  %v1669_v54 = vld [vmem:[%s2200_s9 + $0x8] sm:$0xff]  }
 0x113   :  { %v1424_v56 = vld [vmem:[%s2205_s14 + $0x2] sm:$0x3] }
 0x114   :  { %v791_v58 = vmax.f32 %v786_v57, 0.0  ;;  %v1670_v57 = vld [vmem:[%s2200_s9] sm:$0xff]  }
 0x116   :  { %v793_v59 = vsel %vm792_vm1, %v791_v58, 0.0  ;;  %v802_v60 = vmul.f32 %v791_v58, %v791_v58 }
 0x117   :  { %v794_v61 = vrot.slane %v793_v59, 4 }
 0x118   :  { %v803_v62 = vsel %vm792_vm1, %v802_v60, 0.0 }
 0x119   :  { %v795_v63 = vadd.f32 %v794_v61, %v793_v59  ;;  %v804_v0 = vrot.slane %v803_v62, 4 }
 0x11b   :  { %v796_v1 = vrot.slane %v795_v63, 2  ;;  %v805_v2 = vadd.f32 %v804_v0, %v803_v62 }
 0x11d   :  { %v797_v3 = vadd.f32 %v796_v1, %v795_v63  ;;  %v806_v4 = vrot.slane %v805_v2, 2  ;;  %v1426_v1 = vld [vmem:[%s2201_s10] ss:$0 sm:$0xff] }
 0x11f   :  { %v798_v5 = vrot.slane %v797_v3, 1  ;;  %v807_v6 = vadd.f32 %v806_v4, %v805_v2 }
 0x121   :  { %v799_v7 = vadd.f32 %v798_v5, %v797_v3  ;;  %v808_v8 = vrot.slane %v807_v6, 1 }
 0x123   :  { %v801_v9 = vmul.f32 0.5, %v799_v7  ;;  %v809_v10 = vadd.f32 %v808_v8, %v807_v6 }
 0x125   :  { %v810_v11 = vmul.f32 0.5, %v809_v10  ;;  %v811_v12 = vmul.f32 %v801_v9, %v801_v9  ;;  %v813_v15 = vsub.f32 %v791_v58, %v801_v9  ;;  %v1425_v58 = vld [vmem:[%s2206_s15 + $0x2] sm:$0x3] }
 0x127   :  { %v812_v13 = vsub.f32 %v810_v11, %v811_v12 }
 0x129   :  { %v814_v14 = vadd.f32 1e-05, %v812_v13 }
 0x12b   :  { %1671 = vrsqrt.f32 %v814_v14 }
 0x138   :  { %v1672_v16 = vpop.eup %1671 }
 0x139   :  { %v816_v18 = vmul.f32 %v1672_v16, %v813_v15 }
 0x13b   :  { %v824_v20 = vmul.f32 %v1411_v17, %v816_v18  ;;  %v1164_v18 = vld [vmem:[%s2202_s11 + $0x18] sm:$0xff] }
 0x13d   :  { %v832_v21 = vadd.f32 %v1412_v19, %v824_v20  ;;  %v1163_v19 = vld [vmem:[%s2202_s11 + $0x10] sm:$0xff]  ;;  %v1162_v20 = vld [vmem:[%s2202_s11 + $0x8] sm:$0xff] }
 0x13f   :  { %v833_v22 = vpack.c.bf16 %v832_v21, %v832_v21  ;;  %v1161_v21 = vld [vmem:[%s2202_s11] sm:$0xff] }
 0x141   :  { %1546 = vmatmul.mubr.msk.bf16.vlgmr.msra.gmra.mxu0 %vm857_vm2, %v833_v22 }
 0x142   :  { %1569 = vmatprep.mubr.msk.bf16.mxu0 %vm1745_vm0, %v1744_v27  ;;  %1562 = vmatpush3.bf16.msra.mxu0 %v1667_v52 }
 0x143   :  { %1563 = vmatprep.subr.bf16.mxu0 %v1744_v27 }
 0x146   :  { %1564 = vmatpush3.bf16.msra.mxu0 %v1668_v53 }
 0x147   :  { %1565 = vmatprep.subr.bf16.mxu0 %v1744_v27 }
 0x14a   :  { %1566 = vmatpush3.bf16.msra.mxu0 %v1669_v54 }
 0x14b   :  { %1567 = vmatprep.subr.bf16.mxu0 %v1744_v27 }
 0x14e   :  { %1568 = vmatpush3.bf16.msra.mxu0 %v1670_v57 }
 0x201   :  { %v895_v26 = vpop.f32.mrf.mxu0 }
 0x202   :  { %v896_v29 = vadd.f32 %v1413_v25, %v895_v26 }
 0x203   :  { %v1547_v30 = vpop.f32.mrf.mxu0 }
 0x204   :  { %v916_v31 = vsel %vm857_vm2, %v896_v29, %v914_v28 }
 0x205   :  { %v917_v32 = vpack.c.bf16 %v916_v31, %v916_v31  ;;  %v898_v33 = vpop.f32.mrf.mxu0 }
 0x207   :  { %v1548_v34 = vpop.f32.mrf.mxu0  ;;  %1558 = vmatmul.mubr.msk.bf16.vlgmr.msra.gmra.mxu1 %vm948_vm3, %v917_v32 }
 0x208   :  { %1581 = vmatprep.mubr.msk.f32.mxu1 %vm1745_vm0, %v1744_v27  ;;  %1574 = vmatpush3.msra.mxu1 %v1164_v18 }
 0x209   :  { %1575 = vmatprep.subr.mxu1 %v1744_v27 }
 0x20a   :  { %1576 = vmatpush3.msra.mxu1 %v1163_v19 }
 0x20b   :  { %1577 = vmatprep.subr.mxu1 %v1744_v27 }
 0x20c   :  { %1578 = vmatpush3.msra.mxu1 %v1162_v20 }
 0x20d   :  { %1579 = vmatprep.subr.mxu1 %v1744_v27  ;;  %v1433_v27 = vld [vmem:[%s2203_s12] ss:$0 sm:$0xff]  ;;  %s1749_s12 = smov 127  }
 0x20e   :  { %1580 = vmatpush3.msra.mxu1 %v1161_v21 }
 0x2c7   :  { %v986_v36 = vpop.f32.mrf.mxu1 }
 0x2c8   :  { %v987_v37 = vadd.f32 %v1417_v35, %v986_v36 }
 0x2c9   :  { %v1559_v38 = vpop.f32.mrf.mxu1 }
 0x2ca   :  { %1673 = vtanh.f32 %v987_v37  ;;  %v1423_v42 = vmul.f32 -1.442695, %v987_v37 }
 0x2cb   :  { %v989_v39 = vpop.f32.mrf.mxu1 }
 0x2cc   :  { %1675 = vpow2.f32 %v1423_v42 }
 0x2cd   :  { %v1560_v40 = vpop.f32.mrf.mxu1 }
 0x2d7   :  { %v1674_v41 = vpop.eup %1673 }
 0x2d8   :  { %1005 = vrot.lane.b32.xlu0 %v1674_v41, %s1746_s29 }
 0x2d9   :  { %v1676_v43 = vpop.eup %1675 }
 0x2da   :  { %v995_v44 = vadd.f32 1.0, %v1676_v43 }
 0x2dc   :  { %1677 = vrcp.f32 %v995_v44 }
 0x2e9   :  { %v1678_v45 = vpop.eup %1677 }
 0x2ea   :  { %v1003_v49 = vmul.f32 %v1678_v45, %v1001_v48 }
 0x34a   :  { %v1006_v46 = vpop.permute.xlu0 %1005 }
 0x34b   :  { %v1008_v47 = vmul.f32 %v1678_v45, %v1006_v46 }
 0x34d   :  { %1010 = vrot.lane.b32.xlu1 %v1008_v47, %s1746_s29 }
 0x3bf   :  { %v1011_v50 = vpop.permute.xlu1 %1010 }
 0x3c0   :  { %v2110_v51 = vadd.f32 %v1011_v50, %v1003_v49 }
 0x3c2   :  { %1679 = vtanh.f32 %v2110_v51 }
 0x3cf   :  { %v1680_v55 = vpop.eup %1679 }
 0x3d0   :  { %1016 = vrot.lane.b32.xlu0 %v1680_v55, %s1746_s29 }
 0x3d4   :  { %1038 = vrot.lane.b32.xlu0 %v1424_v56, %s1746_s29 }
 0x3d8   :  { %1124 = vrot.lane.b32.xlu0 %v1425_v58, %s1746_s29 }
 0x442   :  { %v1017_v59 = vpop.permute.xlu0 %1016 }
 0x443   :  { %v1019_v60 = vmul.f32 %v1678_v45, %v1017_v59 }
 0x445   :  { %1034 = vrot.lane.b32.xlu1 %v1019_v60, %s1747_s22 }
 0x446   :  { %v1039_v61 = vpop.permute.xlu0 %1038 }
 0x44a   :  { %v1125_v14 = vpop.permute.xlu0 %1124 }
 0x4b7   :  { %v2138_v62 = vpop.permute.xlu1 %1034 }
 0x4b8   :  { %v1041_v63 = vsel %vm857_vm2, %v2138_v62, %v1039_v61 }
 0x4b9   :  { %v1042_v0 = vpack.c.bf16 %v1041_v63, %v1041_v63 }
 0x4bb   :  { %1570 = vmatmul.mubr.msk.bf16.vlgmr.msra.gmra.mxu0 %vm948_vm3, %v1042_v0  ;;  %v1282_v0 = vmul.f32 -0.5, %v1264_v23 }
 0x57b   :  { %v1110_v2 = vpop.f32.mrf.mxu0 }
 0x57c   :  { %v1111_v3 = vadd.f32 %v1426_v1, %v1110_v2  ;;  %v1283_v1 = vmul.f32 %v1282_v0, %v1264_v23 }
 0x57d   :  { %v1571_v4 = vpop.f32.mrf.mxu0 }
 0x57e   :  { %1681 = vtanh.f32 %v1111_v3  ;;  %v1432_v8 = vmul.f32 -1.442695, %v1111_v3 }
 0x57f   :  { %v1113_v5 = vpop.f32.mrf.mxu0 }
 0x580   :  { %1683 = vpow2.f32 %v1432_v8 }
 0x581   :  { %v1572_v6 = vpop.f32.mrf.mxu0 }
 0x58b   :  { %v1682_v7 = vpop.eup %1681 }
 0x58c   :  { %1129 = vrot.lane.b32.xlu1 %v1682_v7, %s1746_s29 }
 0x58d   :  { %v1684_v9 = vpop.eup %1683 }
 0x58e   :  { %v1119_v10 = vadd.f32 1.0, %v1684_v9 }
 0x590   :  { %1685 = vrcp.f32 %v1119_v10 }
 0x59d   :  { %v1686_v11 = vpop.eup %1685 }
 0x59e   :  { %v1127_v15 = vmul.f32 %v1686_v11, %v1125_v14 }
 0x5fe   :  { %v1130_v12 = vpop.permute.xlu1 %1129 }
 0x5ff   :  { %v1132_v13 = vmul.f32 %v1686_v11, %v1130_v12 }
 0x601   :  { %1134 = vrot.lane.b32.xlu1 %v1132_v13, %s1746_s29 }
 0x673   :  { %v1135_v16 = vpop.permute.xlu1 %1134 }
 0x674   :  { %v2148_v17 = vadd.f32 %v1135_v16, %v1127_v15 }
 0x676   :  { %1687 = vtanh.f32 %v2148_v17 }
 0x683   :  { %v1688_v22 = vpop.eup %1687 }
 0x684   :  { %1140 = vrot.lane.b32.xlu0 %v1688_v22, %s1746_s29 }
 0x688   :  { %1273 = vrot.lane.b32.xlu0 %v1264_v23, %s1748_s6 }
 0x6f6   :  { %v1141_v24 = vpop.permute.xlu0 %1140 }
 0x6f7   :  { %v1143_v25 = vmul.f32 %v1686_v11, %v1141_v24 }
 0x6f9   :  { %1172 = vrot.lane.b32.xlu1 %v1143_v25, %s1747_s22 }
 0x6fa   :  { %v1274_v52 = vpop.permute.xlu0 %1273 }
 0x76b   :  { %v1173_v26 = vpop.permute.xlu1 %1172 }
 0x76c   :  { %1582 = vmatmul.mubr.msk.f32.vlgmr.msra.gmra.mxu1 %vm857_vm2, %v1173_v26 }
 0x82c   :  { %v1242_v28 = vpop.f32.mrf.mxu1 }
 0x82d   :  { %v1243_v29 = vadd.f32 %v1433_v27, %v1242_v28 }
 0x82e   :  { %v1583_v30 = vpop.f32.mrf.mxu1 }
 0x82f   :  { %v1249_v31 = vand.u32 2147483647, %v1243_v29  ;;  %v1246_v42 = vmax.f32 %v1243_v29, 0.0  ;;  %vm1247_vm5 = vcmp.ne.f32.partialorder %v1243_v29, %v1243_v29 }
 0x831   :  { %v1250_v32 = vsub.f32 0.0, %v1249_v31 }
 0x833   :  { %v1251_v33 = vmul.f32 1.442695, %v1250_v32 }
 0x835   :  { %1689 = vpow2.f32 %v1251_v33 }
 0x842   :  { %v1690_v34 = vpop.eup %1689 }
 0x843   :  { %v1253_v35 = vadd.f32 1.0, %v1690_v34  ;;  %v1256_v36 = vmul.f32 -0.5, %v1690_v34  ;;  %v1259_v38 = vand.u32 2147483647, %v1690_v34 }
 0x845   :  { %1691 = vlog2.f32 %v1253_v35  ;;  %v1257_v37 = vadd.f32 1.0, %v1256_v36  ;;  %vm1260_vm4 = vcmp.lt.f32.partialorder %v1259_v38, 0.0004427343 }
 0x847   :  { %v1258_v41 = vmul.f32 %v1690_v34, %v1257_v37 }
 0x852   :  { %v1692_v39 = vpop.eup %1691 }
 0x853   :  { %v1255_v40 = vmul.f32 0.6931472, %v1692_v39 }
 0x855   :  { %v1261_v43 = vsel %vm1260_vm4, %v1258_v41, %v1255_v40 }
 0x856   :  { %v1262_v44 = vadd.f32 %v1261_v43, %v1246_v42 }
 0x858   :  { %v1263_v45 = vsel %vm1247_vm5, %v1243_v29, %v1262_v44 }
 0x859   :  { %1693 = vrsqrt.f32 %v1263_v45  ;;  %v1284_v46 = vmul.f32 6.2831855, %v1263_v45  ;;  %v1293_v47 = vadd.f32 6.2831855, %v1263_v45  ;;  %vm1267_vm6 = vcmp.eq.f32.partialorder %v1263_v45, inf }
 0x85a   :  { %v1270_v50 = vand.u32 2147483648, %v1263_v45  ;;  %vm1269_vm7 = vcmp.eq.f32.partialorder %v1263_v45, 0.0 }
 0x85b   :  { %1695 = vlog2.f32 %v1284_v46 }
 0x85c   :  { %1697 = vlog2.f32 %v1293_v47 }
 0x866   :  { %v1694_v48 = vpop.eup %1693 }
 0x867   :  { %v1266_v49 = vmul.f32 %v1694_v48, %v1263_v45 }
 0x868   :  { %v1696_v53 = vpop.eup %1695 }
 0x869   :  { %v1268_v54 = vsel %vm1267_vm6, %v1263_v45, %v1266_v49  ;;  %v1698_v55 = vpop.eup %1697  ;;  %v1286_v57 = vmul.f32 0.6931472, %v1696_v53 }
 0x86a   :  { %v1271_v56 = vsel %vm1269_vm7, %v1270_v50, %v1268_v54  ;;  %v1295_v59 = vmul.f32 0.6931472, %v1698_v55 }
 0x86b   :  { %v1276_v58 = vmul.f32 %v1274_v52, %v1271_v56  ;;  %v1287_v60 = vmul.f32 0.5, %v1286_v57 }
 0x86c   :  { %v1296_v61 = vadd.f32 1.0, %v1295_v59 }
 0x86d   :  { %1278 = vrot.lane.b32.xlu0 %v1276_v58, %s1749_s12  ;;  %1289 = vrot.lane.b32.xlu1 %v1287_v60, %s1749_s12 }
 0x86e   :  { %v1297_v63 = vmul.f32 -0.5, %v1296_v61 }
 0x871   :  { %1303 = vrot.lane.b32.xlu0 %v1297_v63, %s1748_s6  ;;  %1145 = vrot.lane.b32.xlu1 %v1143_v25, %s1750_s13 }
 0x875   :  { %1149 = vrot.lane.b32.xlu1 %v2110_v51, %s1746_s29  ;;  %s1699_s29 = scalar_lea.vmem %s1325_s0, 32 }
 0x876   :  { %p1700_p0 = scmp.ne.s32.totalorder %s1325_s0, %s1699_s29  ;;  %p1705_p2 = scmp.lt.s32.totalorder %s1699_s29, %s1699_s29 }
 0x878   :  { %p1706_p3 = por %p1705_p2, %p1704_p1 }
 0x879   :  { %1153 = vrot.lane.b32.xlu1 %v2148_v17, %s1747_s22 }
 0x87a   :  { %p1707_p4 = pnand %p1706_p3, %p1700_p0 }
 0x8df   :  { %v1290_v2 = vpop.permute.xlu1 %1289 }
 0x8e0   :  { %v1292_v3 = vsub.f32 %v1283_v1, %v1290_v2 }
 0x8e2   :  { %1299 = vrot.lane.b32.xlu0 %v1292_v3, %s1748_s6 }
 0x8e3   :  { %v1146_v4 = vpop.permute.xlu1 %1145 }
 0x8e4   :  { %v1156_v6 = vsel %vm857_vm2, %v2138_v62, %v1146_v4 }
 0x8e6   :  { %1307 = vrot.lane.b32.xlu0 %v1263_v45, %s1751_s28 }
 0x8e7   :  { %v1150_v5 = vpop.permute.xlu1 %1149 }
 0x8e8   :  { %v1157_v51 = vsel %vm948_vm3, %v1156_v6, %v1150_v5 }
 0x8eb   :  { %v1154_v7 = vpop.permute.xlu1 %1153 }
 0x8ec   :  { %v1159_v8 = vsel %vm1158_vm8, %v1157_v51, %v1154_v7 }
 0x8ed   :  { %1160 = vst [vmem:[#allocation2] sm:$0x3] %v1159_v8 }
 0x8ee   :  { %1710 = shalt.err (!%p1707_p4)
}
 0x8ef   :  { %1327 = dma.vmem_to_hbm [thread:$0]  %s1325_s0, 32, %s2207_s16, [#allocation3]   ;;  %v1279_v9 = vpop.permute.xlu0 %1278  ;;  %vm1310_vm9 = vcmask 7168   ;;  %vm1312_vm10 = vcmask 15360   ;;  %vm1314_vm11 = vcmask 23552   ;;  %vm1316_vm12 = vcmask 25600  }
 0x8f0   :  { %v1281_v62 = vadd.f32 %v1279_v9, %v1263_v45  ;;  %s1753_s18 = smov [#allocation4]  }
 0x8f1   :  { %s1334_s19 = sshll.u32 %s1753_s18, 4  ;;  %s1335_s19 = int_to_ptr.vmem [resolvable:$true] %s1334_s19 }
 0x8f2   :  { %s1719_s2 = scalar_lea.vmem %s1335_s19, 32  ;;  %p1724_p6 = scmp.lt.s32.totalorder %s1335_s19, %s1335_s19 }
 0x8f3   :  { %v1304_v10 = vpop.permute.xlu0 %1303  ;;  %p1720_p5 = scmp.ne.s32.totalorder %s1335_s19, %s1719_s2  ;;  %p1725_p7 = scmp.lt.s32.totalorder %s1719_s2, %s1719_s2 }
 0x8f5   :  { %p1726_p8 = por %p1725_p7, %p1724_p6 }
 0x8f7   :  { %p1727_p9 = pnand %p1726_p8, %p1720_p5 }
 0x954   :  { %v1300_v11 = vpop.permute.xlu0 %1299 }
 0x955   :  { %v1311_v12 = vsel %vm1310_vm9, %v1281_v62, %v1300_v11 }
 0x956   :  { %v1313_v13 = vsel %vm1312_vm10, %v1311_v12, %v1304_v10 }
 0x958   :  { %v1308_v14 = vpop.permute.xlu0 %1307 }
 0x959   :  { %v1315_v15 = vsel %vm1314_vm11, %v1313_v13, %v1308_v14 }
 0x95a   :  { %1317 = vst.msk [vmem:[#allocation4] sm:$0x3] %vm1316_vm12, %v1315_v15 }
 0x95b   :  { %1730 = shalt.err (!%p1727_p9)
}
 0x95c   :  { %1337 = dma.vmem_to_hbm [thread:$0]  %s1335_s19, 32, %s2208_s17, [#allocation5]  }
 0x95d   :  { %1739 = dma.done.wait [#allocation3], 32  }
 0x95e   :  { %1740 = vsyncadd [#allocation3], 4294967264 }
 0x95f   :  { %1741 = dma.done.wait [#allocation5], 32  }
 0x960   :  { %1742 = vsyncadd [#allocation5], 4294967264 }
 0x961   :  { %1344 = vsyncpa [#allocation3], 1 }
 0x962   :  { %1345 = vsyncpa [#allocation5], 1 }

</bundles_post_ra>
